<compile_context>
chip_gen: v7x
topology: tpu7x:2x2x1
jax: 0.10.0
libtpu: 0.0.40
codegen_flags: <defaults>
</compile_context>

<pallas_src>
import functools

import numpy as np
import jax
import jax.numpy as jnp
from jax.experimental import pallas as pl
from jax.experimental.pallas import tpu as pltpu


def _pick_tile(n, target, align):
    """Largest tile <= target that divides n and is a multiple of `align`;
    falls back to the full dimension (always legal for a BlockSpec)."""
    if n <= target:
        return n
    t = (target // align) * align
    while t >= align:
        if n % t == 0:
            return t
        t -= align
    return n


def _clause_kernel(g_ref, o_ref, *, S, L, gamma):
    """g_ref: (S*L, tb, tg) gathered valuations; o_ref: (tb, tg) un-normalized C."""
    inv_gamma = jnp.float32(1.0 / gamma)

    def z_of(s):
        # Running product over the body-literal axis L (single live temp).
        p = g_ref[s * L]
        for l in range(1, L):
            p = p * g_ref[s * L + l]
        return p * inv_gamma

    # Streaming (online) logsumexp over the substitution axis S.
    m = z_of(0)                      # running max
    ssum = jnp.ones_like(m)          # running sum of exp(z - m)
    for s in range(1, S):
        z = z_of(s)
        m_new = jnp.maximum(m, z)
        ssum = ssum * jnp.exp(m - m_new) + jnp.exp(z - m_new)
        m = m_new

    o_ref[...] = (jnp.float32(gamma) * (m + jnp.log(ssum))).astype(o_ref.dtype)


def make_clause_function(I_i, gamma=0.01, *, tb_target=256, tg_target=512):
    """Returns a jitted forward(x) equivalent to ClauseFunction(I_i, gamma)."""
    I_i = jnp.asarray(I_i)
    assert I_i.ndim == 4 and I_i.shape[0] == 1, "I_i must be (1, G, S, L)"
    _, G, S, L = I_i.shape
    gamma = float(gamma)

    # Static per-clause index table, built ONCE (review: don't rebuild the
    # gather structure every call).  idx[s*L + l, g] = I_i[0, g, s, l].
    idx = jnp.transpose(I_i[0].astype(jnp.int32), (1, 2, 0)).reshape(S * L, G)

    kernel = functools.partial(_clause_kernel, S=S, L=L, gamma=gamma)

    def forward(x):
        B = x.shape[0]
        assert x.shape == (B, G)
        xf = x.astype(jnp.float32)

        # TODO(synk): the data-dependent gather and the global max-normalization
        # live in this thin XLA wrapper (per perf review); the kernel holds the
        # prod(L) + softor(S) math.
        gathered = jnp.take(xf, idx, axis=1)              # (B, S*L, G)
        gathered = jnp.transpose(gathered, (1, 0, 2))     # (S*L, B, G), G on lanes

        tb = _pick_tile(B, tb_target, 8)
        tg = _pick_tile(G, tg_target, 128)
        grid = (B // tb, G // tg)

        c = pl.pallas_call(
            kernel,
            grid_spec=pltpu.PrefetchScalarGridSpec(
                num_scalar_prefetch=0,
                grid=grid,
                in_specs=[pl.BlockSpec((S * L, tb, tg), lambda i, j: (0, i, j))],
                out_specs=pl.BlockSpec((tb, tg), lambda i, j: (i, j)),
            ),
            out_shape=jax.ShapeDtypeStruct((B, G), jnp.float32),
            compiler_params=pltpu.CompilerParams(
                dimension_semantics=("parallel", "parallel")),
        )(gathered)

        # Global softor normalization: C / max(C) iff max(C) > 1.  This is a
        # cross-tile reduction, so it is applied outside the tiled kernel.
        mx = jnp.max(c)
        scale = jnp.where(mx > 1.0, 1.0 / mx, jnp.float32(1.0))
        return c * scale

    return jax.jit(forward)


def clause_function(x, I_i, gamma=0.01):
    """One-shot convenience wrapper."""
    return make_clause_function(I_i, gamma)(x)


def clause_function_ref(x, I_i, gamma=0.01):
    """Pure-JAX reference mirroring the PyTorch forward (for verification)."""
    B, G = x.shape
    gathered = x[jnp.arange(B)[:, None, None, None], I_i]        # (B, G, S, L)
    P = jnp.prod(gathered, axis=3)                               # (B, G, S)
    z = P / gamma
    m = jnp.max(z, axis=2)
    lse = gamma * (m + jnp.log(jnp.sum(jnp.exp(z - m[..., None]), axis=2)))
    mx = jnp.max(lse)
    return jnp.where(mx > 1.0, lse / mx, lse)


if __name__ == "__main__":
    key = jax.random.PRNGKey(0)
    kx, ki = jax.random.split(key)

    # Small shapes consistent with the module: B batch, G ground atoms,
    # S substituted clause bodies, L max body length.
    B, G, S, L = 2, 32, 4, 3
    gamma = 0.01

    x = jax.random.uniform(kx, (B, G), dtype=jnp.float32)              # valuations in [0, 1]
    I_i = jax.random.randint(ki, (1, G, S, L), 0, G, dtype=jnp.int32)  # atom indices

    fwd = make_clause_function(I_i, gamma)
    out = jax.block_until_ready(fwd(x))

    ref = clause_function_ref(x, I_i, gamma)
    np.testing.assert_allclose(np.asarray(out), np.asarray(ref), rtol=1e-4, atol=1e-5)

    print("KERNEL_OK")
</pallas_src>

<mosaic_0001>
module attributes {stable_mosaic.version = 11 : i64} {
  func.func @_clause_kernel(%arg0: i32, %arg1: i32, %arg2: memref<12x2x32xf32, #tpu.memory_space<vmem>>, %arg3: memref<2x32xf32, #tpu.memory_space<vmem>>) attributes {dimension_semantics = [#tpu.dimension_semantics<parallel>, #tpu.dimension_semantics<parallel>], iteration_bounds = array<i64: 1, 1>, scalar_prefetch = 0 : i64, scratch_operands = 0 : i64, tpu.core_type = #tpu.core_type<tc>, window_params = [{transform_indices = @transform_0, window_bounds = array<i64: 12, 2, 32>}, {transform_indices = @transform_1, window_bounds = array<i64: 2, 32>}]} {
    %c0 = arith.constant 0 : index
    %c0_0 = arith.constant 0 : index
    %c0_1 = arith.constant 0 : index
    %0 = vector.load %arg2[%c0, %c0_0, %c0_1] : memref<12x2x32xf32, #tpu.memory_space<vmem>>, vector<1x2x32xf32>
    %1 = vector.shape_cast %0 : vector<1x2x32xf32> to vector<2x32xf32>
    %c1 = arith.constant 1 : index
    %c0_2 = arith.constant 0 : index
    %c0_3 = arith.constant 0 : index
    %2 = vector.load %arg2[%c1, %c0_2, %c0_3] : memref<12x2x32xf32, #tpu.memory_space<vmem>>, vector<1x2x32xf32>
    %3 = vector.shape_cast %2 : vector<1x2x32xf32> to vector<2x32xf32>
    %4 = arith.mulf %1, %3 : vector<2x32xf32>
    %c2 = arith.constant 2 : index
    %c0_4 = arith.constant 0 : index
    %c0_5 = arith.constant 0 : index
    %5 = vector.load %arg2[%c2, %c0_4, %c0_5] : memref<12x2x32xf32, #tpu.memory_space<vmem>>, vector<1x2x32xf32>
    %6 = vector.shape_cast %5 : vector<1x2x32xf32> to vector<2x32xf32>
    %7 = arith.mulf %4, %6 : vector<2x32xf32>
    %cst = arith.constant 1.000000e+02 : f32
    %8 = vector.broadcast %cst : f32 to vector<2x32xf32>
    %9 = arith.mulf %7, %8 : vector<2x32xf32>
    %cst_6 = arith.constant 1.000000e+00 : f32
    %10 = vector.broadcast %cst_6 : f32 to vector<2x32xf32>
    %c3 = arith.constant 3 : index
    %c0_7 = arith.constant 0 : index
    %c0_8 = arith.constant 0 : index
    %11 = vector.load %arg2[%c3, %c0_7, %c0_8] : memref<12x2x32xf32, #tpu.memory_space<vmem>>, vector<1x2x32xf32>
    %12 = vector.shape_cast %11 : vector<1x2x32xf32> to vector<2x32xf32>
    %c4 = arith.constant 4 : index
    %c0_9 = arith.constant 0 : index
    %c0_10 = arith.constant 0 : index
    %13 = vector.load %arg2[%c4, %c0_9, %c0_10] : memref<12x2x32xf32, #tpu.memory_space<vmem>>, vector<1x2x32xf32>
    %14 = vector.shape_cast %13 : vector<1x2x32xf32> to vector<2x32xf32>
    %15 = arith.mulf %12, %14 : vector<2x32xf32>
    %c5 = arith.constant 5 : index
    %c0_11 = arith.constant 0 : index
    %c0_12 = arith.constant 0 : index
    %16 = vector.load %arg2[%c5, %c0_11, %c0_12] : memref<12x2x32xf32, #tpu.memory_space<vmem>>, vector<1x2x32xf32>
    %17 = vector.shape_cast %16 : vector<1x2x32xf32> to vector<2x32xf32>
    %18 = arith.mulf %15, %17 : vector<2x32xf32>
    %cst_13 = arith.constant 1.000000e+02 : f32
    %19 = vector.broadcast %cst_13 : f32 to vector<2x32xf32>
    %20 = arith.mulf %18, %19 : vector<2x32xf32>
    %21 = arith.maximumf %9, %20 : vector<2x32xf32>
    %22 = arith.subf %9, %21 : vector<2x32xf32>
    %23 = math.exp %22 : vector<2x32xf32>
    %24 = arith.mulf %10, %23 : vector<2x32xf32>
    %25 = arith.subf %20, %21 : vector<2x32xf32>
    %26 = math.exp %25 : vector<2x32xf32>
    %27 = arith.addf %24, %26 : vector<2x32xf32>
    %c6 = arith.constant 6 : index
    %c0_14 = arith.constant 0 : index
    %c0_15 = arith.constant 0 : index
    %28 = vector.load %arg2[%c6, %c0_14, %c0_15] : memref<12x2x32xf32, #tpu.memory_space<vmem>>, vector<1x2x32xf32>
    %29 = vector.shape_cast %28 : vector<1x2x32xf32> to vector<2x32xf32>
    %c7 = arith.constant 7 : index
    %c0_16 = arith.constant 0 : index
    %c0_17 = arith.constant 0 : index
    %30 = vector.load %arg2[%c7, %c0_16, %c0_17] : memref<12x2x32xf32, #tpu.memory_space<vmem>>, vector<1x2x32xf32>
    %31 = vector.shape_cast %30 : vector<1x2x32xf32> to vector<2x32xf32>
    %32 = arith.mulf %29, %31 : vector<2x32xf32>
    %c8 = arith.constant 8 : index
    %c0_18 = arith.constant 0 : index
    %c0_19 = arith.constant 0 : index
    %33 = vector.load %arg2[%c8, %c0_18, %c0_19] : memref<12x2x32xf32, #tpu.memory_space<vmem>>, vector<1x2x32xf32>
    %34 = vector.shape_cast %33 : vector<1x2x32xf32> to vector<2x32xf32>
    %35 = arith.mulf %32, %34 : vector<2x32xf32>
    %cst_20 = arith.constant 1.000000e+02 : f32
    %36 = vector.broadcast %cst_20 : f32 to vector<2x32xf32>
    %37 = arith.mulf %35, %36 : vector<2x32xf32>
    %38 = arith.maximumf %21, %37 : vector<2x32xf32>
    %39 = arith.subf %21, %38 : vector<2x32xf32>
    %40 = math.exp %39 : vector<2x32xf32>
    %41 = arith.mulf %27, %40 : vector<2x32xf32>
    %42 = arith.subf %37, %38 : vector<2x32xf32>
    %43 = math.exp %42 : vector<2x32xf32>
    %44 = arith.addf %41, %43 : vector<2x32xf32>
    %c9 = arith.constant 9 : index
    %c0_21 = arith.constant 0 : index
    %c0_22 = arith.constant 0 : index
    %45 = vector.load %arg2[%c9, %c0_21, %c0_22] : memref<12x2x32xf32, #tpu.memory_space<vmem>>, vector<1x2x32xf32>
    %46 = vector.shape_cast %45 : vector<1x2x32xf32> to vector<2x32xf32>
    %c10 = arith.constant 10 : index
    %c0_23 = arith.constant 0 : index
    %c0_24 = arith.constant 0 : index
    %47 = vector.load %arg2[%c10, %c0_23, %c0_24] : memref<12x2x32xf32, #tpu.memory_space<vmem>>, vector<1x2x32xf32>
    %48 = vector.shape_cast %47 : vector<1x2x32xf32> to vector<2x32xf32>
    %49 = arith.mulf %46, %48 : vector<2x32xf32>
    %c11 = arith.constant 11 : index
    %c0_25 = arith.constant 0 : index
    %c0_26 = arith.constant 0 : index
    %50 = vector.load %arg2[%c11, %c0_25, %c0_26] : memref<12x2x32xf32, #tpu.memory_space<vmem>>, vector<1x2x32xf32>
    %51 = vector.shape_cast %50 : vector<1x2x32xf32> to vector<2x32xf32>
    %52 = arith.mulf %49, %51 : vector<2x32xf32>
    %cst_27 = arith.constant 1.000000e+02 : f32
    %53 = vector.broadcast %cst_27 : f32 to vector<2x32xf32>
    %54 = arith.mulf %52, %53 : vector<2x32xf32>
    %55 = arith.maximumf %38, %54 : vector<2x32xf32>
    %56 = arith.subf %38, %55 : vector<2x32xf32>
    %57 = math.exp %56 : vector<2x32xf32>
    %58 = arith.mulf %44, %57 : vector<2x32xf32>
    %59 = arith.subf %54, %55 : vector<2x32xf32>
    %60 = math.exp %59 : vector<2x32xf32>
    %61 = arith.addf %58, %60 : vector<2x32xf32>
    %62 = math.log %61 : vector<2x32xf32>
    %63 = arith.addf %55, %62 : vector<2x32xf32>
    %cst_28 = arith.constant 0.00999999977 : f32
    %64 = vector.broadcast %cst_28 : f32 to vector<2x32xf32>
    %65 = arith.mulf %64, %63 : vector<2x32xf32>
    %c0_29 = arith.constant 0 : index
    %c0_30 = arith.constant 0 : index
    %66 = vector.load %arg3[%c0_29, %c0_30] : memref<2x32xf32, #tpu.memory_space<vmem>>, vector<2x32xf32>
    tpu.vector_store %arg3[%c0_29, %c0_30], %65 {strides = array<i32>} : memref<2x32xf32, #tpu.memory_space<vmem>>, vector<2x32xf32>,
    return
  }
  func.func @transform_0(%arg0: i32, %arg1: i32) -> (i32, i32, i32) {
    %c0_i32 = arith.constant 0 : i32
    %c0_i32_0 = arith.constant 0 : i32
    return %c0_i32, %arg0, %arg1 : i32, i32, i32
  }
  func.func @transform_1(%arg0: i32, %arg1: i32) -> (i32, i32) {
    %c0_i32 = arith.constant 0 : i32
    return %arg0, %arg1 : i32, i32
  }
}

</mosaic_0001>

<bundles_post_ra>
// kernel: forward.1
= control target key start
LH: loop header
LB: loop body
LE: loop exit
PB: predicated region body
PF: predicated region fallthrough
CT: control target
= control target key end

     0   :  { %vm73_vm0 = vcmask 254976   ;;  %s153_s0 = inlined_call_operand.vmem [shape: f32[12,2,32], index: 0, kind: input, shape index: {}]   ;;  %s154_s1 = inlined_call_operand.vmem [shape: f32[2,32], index: 1, kind: output, shape index: {}]  }
   0x1   :  { %v8_v0 = vld [vmem:[%s153_s0] sm:$0x3]  ;;  %v79_v1 = vld [vmem:[%s153_s0 + $0x2] sm:$0x3]  ;;  %v80_v2 = vld [vmem:[%s153_s0 + $0x4] sm:$0x3] }
   0x2   :  { %v11_v3 = vmul.f32 %v79_v1, %v8_v0  ;;  %v81_v4 = vld [vmem:[%s153_s0 + $0x6] sm:$0x3]  ;;  %v82_v5 = vld [vmem:[%s153_s0 + $0x8] sm:$0x3]  ;;  %v83_v6 = vld [vmem:[%s153_s0 + $0xa] sm:$0x3] }
   0x3   :  { %v20_v7 = vmul.f32 %v82_v5, %v81_v4  ;;  %v84_v8 = vld [vmem:[%s153_s0 + $0xc] sm:$0x3]  ;;  %v85_v9 = vld [vmem:[%s153_s0 + $0xe] sm:$0x3]  ;;  %v86_v10 = vld [vmem:[%s153_s0 + $0x10] sm:$0x3] }
   0x4   :  { %v14_v11 = vmul.f32 %v80_v2, %v11_v3  ;;  %v37_v12 = vmul.f32 %v85_v9, %v84_v8  ;;  %v87_v13 = vld [vmem:[%s153_s0 + $0x12] sm:$0x3]  ;;  %v88_v14 = vld [vmem:[%s153_s0 + $0x14] sm:$0x3]  ;;  %v89_v15 = vld [vmem:[%s153_s0 + $0x16] sm:$0x3] }
   0x5   :  { %v23_v16 = vmul.f32 %v83_v6, %v20_v7  ;;  %v55_v17 = vmul.f32 %v88_v14, %v87_v13 }
   0x6   :  { %v15_v18 = vmul.f32 100.0, %v14_v11  ;;  %v40_v19 = vmul.f32 %v86_v10, %v37_v12 }
   0x7   :  { %v24_v20 = vmul.f32 100.0, %v23_v16  ;;  %v58_v21 = vmul.f32 %v89_v15, %v55_v17 }
   0x8   :  { %v41_v22 = vmul.f32 100.0, %v40_v19 }
   0x9   :  { %v25_v23 = vmax.f32 %v15_v18, %v24_v20  ;;  %v59_v24 = vmul.f32 100.0, %v58_v21 }
   0xb   :  { %v26_v25 = vsub.f32 %v15_v18, %v25_v23  ;;  %v29_v26 = vsub.f32 %v24_v20, %v25_v23  ;;  %v42_v27 = vmax.f32 %v25_v23, %v41_v22 }
   0xd   :  { %v27_v28 = vmul.f32 1.442695, %v26_v25  ;;  %v30_v29 = vmul.f32 1.442695, %v29_v26  ;;  %v43_v30 = vsub.f32 %v25_v23, %v42_v27  ;;  %v47_v31 = vsub.f32 %v41_v22, %v42_v27 }
   0xe   :  { %v60_v32 = vmax.f32 %v42_v27, %v59_v24 }
   0xf   :  { %90 = vpow2.f32 %v27_v28  ;;  %v44_v33 = vmul.f32 1.442695, %v43_v30  ;;  %v48_v34 = vmul.f32 1.442695, %v47_v31 }
  0x10   :  { %92 = vpow2.f32 %v30_v29  ;;  %v61_v35 = vsub.f32 %v42_v27, %v60_v32  ;;  %v65_v36 = vsub.f32 %v59_v24, %v60_v32 }
  0x11   :  { %94 = vpow2.f32 %v44_v33 }
  0x12   :  { %96 = vpow2.f32 %v48_v34  ;;  %v62_v37 = vmul.f32 1.442695, %v61_v35  ;;  %v66_v38 = vmul.f32 1.442695, %v65_v36 }
  0x14   :  { %98 = vpow2.f32 %v62_v37 }
  0x15   :  { %100 = vpow2.f32 %v66_v38 }
  0x19   :  { %v91_v39 = vpop.eup %90 }
  0x1a   :  { %v93_v40 = vpop.eup %92 }
  0x1b   :  { %v95_v41 = vpop.eup %94  ;;  %v32_v42 = vadd.f32 %v93_v40, %v91_v39 }
  0x1c   :  { %v97_v43 = vpop.eup %96 }
  0x1d   :  { %v46_v44 = vmul.f32 %v95_v41, %v32_v42 }
  0x1e   :  { %v99_v45 = vpop.eup %98 }
  0x1f   :  { %v50_v46 = vadd.f32 %v97_v43, %v46_v44  ;;  %v101_v47 = vpop.eup %100 }
  0x21   :  { %v64_v48 = vmul.f32 %v99_v45, %v50_v46 }
  0x23   :  { %v68_v49 = vadd.f32 %v101_v47, %v64_v48 }
  0x25   :  { %102 = vlog2.f32 %v68_v49 }
  0x2f   :  { %v103_v50 = vpop.eup %102 }
  0x30   :  { %v70_v51 = vmul.f32 0.6931472, %v103_v50 }
  0x32   :  { %v71_v52 = vadd.f32 %v70_v51, %v60_v32 }
  0x34   :  { %v72_v53 = vmul.f32 0.01, %v71_v52 }
  0x36   :  { %74 = vst.msk [vmem:[%s154_s1] sm:$0x3] %vm73_vm0, %v72_v53 }

</bundles_post_ra>
